<compile_context>
chip_gen: v6e
topology: v6e:2x2x1
jax: 0.10.0
libtpu: 0.0.40
codegen_flags: <defaults>
</compile_context>

<pallas_src>
import jax
import jax.numpy as jnp
from jax.experimental import pallas as pl
from jax.experimental.pallas import tpu as pltpu


# --------------------------------------------------------------------------
# Kernel
# --------------------------------------------------------------------------
def _diag_pos_linear_kernel(w_ref, x_ref, o_ref):
    # w_ref: (1, tf) positive weights in f32 (exp'ed once in the wrapper).
    # x_ref / o_ref: (tb, tf) tile.  out = x * w  (== x @ diag(w).T).
    # Mixed-precision multiply; only the output is downcast to x's dtype.
    o_ref[...] = (x_ref[...] * w_ref[...]).astype(o_ref.dtype)


# --------------------------------------------------------------------------
# Tiling helpers
# --------------------------------------------------------------------------
def _round_down(v, m):
    return (v // m) * m


def _round_up(v, m):
    return ((v + m - 1) // m) * m


def _sublane_multiple(itemsize):
    # Sub-32-bit dtypes pack along sublanes (bf16 vreg = 16x128, int8 = 32x128).
    return max(8, 32 // itemsize)


def _vmem_plan():
    """(target_tile_bytes, vmem_limit_bytes), sized to this chip's VMEM."""
    try:
        cap = pltpu.get_tpu_info().vmem_capacity_bytes
    except Exception:
        cap = 64 << 20  # conservative: assume v7x-sized VMEM per TensorCore
    if cap >= (96 << 20):            # v5e / v6e: 128 MiB physical VMEM
        return 8 << 20, 64 << 20
    return 6 << 20, 44 << 20         # v7x: 64 MiB physical VMEM per TC


def _pick_tiles(B, F, itemsize, target_tile_bytes, sublane):
    """Pick (tb, tf).  The wrapper guarantees F % 128 == 0 here."""
    assert F % 128 == 0
    # Feature tile: full F if a sublane-deep tile fits the budget, else the
    # largest 128-multiple that does (so tf never blows the VMEM budget).
    tf_cap = max(128, _round_down(target_tile_bytes // (sublane * itemsize), 128))
    tf = min(F, tf_cap)
    # Batch tile: as many rows as fit the per-tile budget.
    max_tb = max(1, target_tile_bytes // (tf * itemsize))
    if B <= max_tb:
        tb = B                       # full-extent block: always legal
    else:
        tb = max(sublane, _round_down(max_tb, sublane))

    # Megacore: a big-enough problem should have >= 2 grid steps along a
    # "parallel" axis so both v7x TensorCores engage (harmless on 1-TC chips).
    if (pl.cdiv(B, tb) * pl.cdiv(F, tf) == 1
            and B * F * itemsize >= (1 << 20)):
        if B >= 2 * sublane:
            half = _round_up(pl.cdiv(B, 2), sublane)
            tb = half if half < B else _round_down(B // 2, sublane)
        elif F >= 256:
            tf = _round_down(pl.cdiv(F, 2), 128)
    return tb, tf


# --------------------------------------------------------------------------
# pallas_call wrapper (x and out are 2-D, F already a multiple of 128)
# --------------------------------------------------------------------------
def _call_elementwise(x2d, w2d, tb, tf, vmem_limit_bytes, donate_x=False):
    B, F = x2d.shape
    # Feature axis OUTER (slow), batch axis inner: the weight block index
    # (0, j) is constant across the inner batch sweep, so Pallas does not
    # re-DMA the weight row every step.
    grid = (pl.cdiv(F, tf), pl.cdiv(B, tb))
    kwargs = {}
    if donate_x:
        kwargs["input_output_aliases"] = {1: 0}
    return pl.pallas_call(
        _diag_pos_linear_kernel,
        out_shape=jax.ShapeDtypeStruct((B, F), x2d.dtype),
        grid_spec=pltpu.PrefetchScalarGridSpec(
            num_scalar_prefetch=0,
            grid=grid,
            in_specs=[
                pl.BlockSpec((1, tf), lambda j, i: (0, j)),    # weights (f32)
                pl.BlockSpec((tb, tf), lambda j, i: (i, j)),   # x tile
            ],
            out_specs=pl.BlockSpec((tb, tf), lambda j, i: (i, j)),
        ),
        compiler_params=pltpu.CompilerParams(
            dimension_semantics=("parallel", "parallel"),
            vmem_limit_bytes=vmem_limit_bytes,
        ),
        **kwargs,
    )(w2d, x2d)


# --------------------------------------------------------------------------
# Public entry point
# --------------------------------------------------------------------------
def diagonal_positive_linear(x, log_weight, donate_x=False):
    """x: (..., F), log_weight: (F,) -> (..., F) == x @ diag(exp(log_weight)).T"""
    *lead, F = x.shape
    assert log_weight.shape == (F,)
    B = 1
    for d in lead:
        B *= d
    x2d = x.reshape(B, F)

    # exp() hoisted out of the kernel; kept in f32 (the parameter dtype) so
    # the in-kernel multiply is mixed precision and only the output is cast.
    pos_w = jnp.exp(log_weight.astype(jnp.float32))

    itemsize = jnp.dtype(x.dtype).itemsize
    sublane = _sublane_multiple(itemsize)
    target_tile_bytes, vmem_limit_bytes = _vmem_plan()

    if F % 128 == 0:
        # Already lane-dense.
        x_in, w_in = x2d, pos_w.reshape(1, F)
        B_in, F_in = B, F
        unpack = lambda o: o
    elif F < 128 and 128 % F == 0:
        # Pack r rows per 128-lane packed row; pad batch to a multiple of r
        # so the packed path applies for ANY batch size, then slice off pad.
        r = 128 // F
        Bp = _round_up(max(B, 1), r)
        xp = jnp.pad(x2d, ((0, Bp - B), (0, 0))) if Bp != B else x2d
        x_in = xp.reshape(Bp // r, r * F)
        w_in = jnp.tile(pos_w, r).reshape(1, r * F)
        B_in, F_in = Bp // r, r * F
        unpack = lambda o: o.reshape(Bp, F)[:B]
    else:
        # Pad the feature dim to the next multiple of 128: lane-dense stores
        # and tf can always be clamped to the VMEM budget even for huge F.
        Fp = _round_up(F, 128)
        x_in = jnp.pad(x2d, ((0, 0), (0, Fp - F)))
        w_in = jnp.pad(pos_w, (0, Fp - F)).reshape(1, Fp)
        B_in, F_in = B, Fp
        unpack = lambda o: o[:, :F]

    tb, tf = _pick_tiles(B_in, F_in, itemsize, target_tile_bytes, sublane)
    out = _call_elementwise(x_in, w_in, tb, tf, vmem_limit_bytes,
                            donate_x=donate_x)
    return unpack(out).reshape(*lead, F)


# --------------------------------------------------------------------------
# Self-test
# --------------------------------------------------------------------------
if __name__ == "__main__":
    features = 32
    batch = 8

    key = jax.random.PRNGKey(0)
    kx, kw = jax.random.split(key)
    x = jax.random.normal(kx, (batch, features), dtype=jnp.float32)

    # Case 1: the module's actual init (log_weight == 0 -> identity map).
    log_weight_init = jnp.zeros((features,), dtype=jnp.float32)
    out_init = jax.block_until_ready(diagonal_positive_linear(x, log_weight_init))
    ref_init = x * jnp.exp(log_weight_init)[None, :]
    assert jnp.allclose(out_init, ref_init, atol=1e-6, rtol=1e-6)

    # Case 2: non-trivial log_weight; packed lane-dense path (F=32 -> r=4).
    log_weight = 0.1 * jax.random.normal(kw, (features,), dtype=jnp.float32)
    out = jax.block_until_ready(diagonal_positive_linear(x, log_weight))
    ref = x * jnp.exp(log_weight)[None, :]
    assert jnp.allclose(out, ref, atol=1e-6, rtol=1e-6)

    # Case 3: batch NOT a multiple of the packing factor -> pad-and-slice path.
    x3 = jax.random.normal(key, (7, features), dtype=jnp.float32)
    out3 = jax.block_until_ready(diagonal_positive_linear(x3, log_weight))
    ref3 = x3 * jnp.exp(log_weight)[None, :]
    assert jnp.allclose(out3, ref3, atol=1e-6, rtol=1e-6)

    # Case 4: F multiple of 128 with leading batch dims (general lane-dense path).
    x4 = jax.random.normal(kx, (2, 4, 256), dtype=jnp.float32)
    lw4 = 0.05 * jax.random.normal(kw, (256,), dtype=jnp.float32)
    out4 = jax.block_until_ready(diagonal_positive_linear(x4, lw4))
    ref4 = x4 * jnp.exp(lw4)[None, None, :]
    assert jnp.allclose(out4, ref4, atol=1e-6, rtol=1e-6)

    # Case 5: F neither a multiple nor a divisor of 128 -> feature-pad path.
    x5 = jax.random.normal(kx, (8, 200), dtype=jnp.float32)
    lw5 = 0.05 * jax.random.normal(kw, (200,), dtype=jnp.float32)
    out5 = jax.block_until_ready(diagonal_positive_linear(x5, lw5))
    ref5 = x5 * jnp.exp(lw5)[None, :]
    assert jnp.allclose(out5, ref5, atol=1e-6, rtol=1e-6)

    # Case 6: bf16 activations; weight stays f32, only the output is downcast.
    x6 = jax.random.normal(kx, (16, 256), dtype=jnp.bfloat16)
    out6 = jax.block_until_ready(diagonal_positive_linear(x6, lw4))
    ref6 = (x6.astype(jnp.float32) * jnp.exp(lw4)[None, :]).astype(jnp.bfloat16)
    assert jnp.allclose(out6.astype(jnp.float32), ref6.astype(jnp.float32),
                        atol=1e-2, rtol=1e-2)

    print("KERNEL_OK")
</pallas_src>

<mosaic_0001>
module attributes {stable_mosaic.version = 11 : i64} {
  func.func @_diag_pos_linear_kernel(%arg0: i32, %arg1: i32, %arg2: memref<1x128xf32, #tpu.memory_space<vmem>>, %arg3: memref<2x128xf32, #tpu.memory_space<vmem>>, %arg4: memref<2x128xf32, #tpu.memory_space<vmem>>) attributes {dimension_semantics = [#tpu.dimension_semantics<parallel>, #tpu.dimension_semantics<parallel>], iteration_bounds = array<i64: 1, 1>, scalar_prefetch = 0 : i64, scratch_operands = 0 : i64, tpu.core_type = #tpu.core_type<tc>, window_params = [{transform_indices = @transform_0, window_bounds = array<i64: 1, 128>}, {transform_indices = @transform_1, window_bounds = array<i64: 2, 128>}, {transform_indices = @transform_2, window_bounds = array<i64: 2, 128>}]} {
    %c0 = arith.constant 0 : index
    %c0_0 = arith.constant 0 : index
    %0 = vector.load %arg3[%c0, %c0_0] : memref<2x128xf32, #tpu.memory_space<vmem>>, vector<2x128xf32>
    %c0_1 = arith.constant 0 : index
    %c0_2 = arith.constant 0 : index
    %1 = vector.load %arg2[%c0_1, %c0_2] : memref<1x128xf32, #tpu.memory_space<vmem>>, vector<1x128xf32>
    %2 = vector.broadcast %1 : vector<1x128xf32> to vector<2x128xf32>
    %3 = arith.mulf %0, %2 : vector<2x128xf32>
    %c0_3 = arith.constant 0 : index
    %c0_4 = arith.constant 0 : index
    %4 = vector.load %arg4[%c0_3, %c0_4] : memref<2x128xf32, #tpu.memory_space<vmem>>, vector<2x128xf32>
    tpu.vector_store %arg4[%c0_3, %c0_4], %3 {strides = array<i32>} : memref<2x128xf32, #tpu.memory_space<vmem>>, vector<2x128xf32>,
    return
  }
  func.func @transform_0(%arg0: i32, %arg1: i32) -> (i32, i32) {
    %c0_i32 = arith.constant 0 : i32
    %c0_i32_0 = arith.constant 0 : i32
    return %c0_i32, %arg0 : i32, i32
  }
  func.func @transform_1(%arg0: i32, %arg1: i32) -> (i32, i32) {
    %c0_i32 = arith.constant 0 : i32
    return %arg1, %arg0 : i32, i32
  }
  func.func @transform_2(%arg0: i32, %arg1: i32) -> (i32, i32) {
    %c0_i32 = arith.constant 0 : i32
    return %arg1, %arg0 : i32, i32
  }
}

</mosaic_0001>

<bundles_post_ra>
// kernel: tpu_custom_call.1
= control target key start
LH: loop header
LB: loop body
LE: loop exit
PB: predicated region body
PF: predicated region fallthrough
CT: control target
= control target key end

     0   :  { %7 = vsyncpa [#allocation3], 0  ;;  %s159_s0 = inlined_call_operand.hbm [shape: f32[1,128], index: 0, kind: input, shape index: {}]   ;;  %s160_s1 = inlined_call_operand.hbm [shape: f32[2,128], index: 1, kind: input, shape index: {}]   ;;  %s161_s2 = inlined_call_operand.hbm [shape: f32[2,128], index: 2, kind: output, shape index: {}]  }
   0x1   :  { %8 = vsyncpa [#allocation6], 0 }
   0x2   :  { %9 = vsyncpa [#allocation4], 0  ;;  %s132_s9 = smov [#allocation2]   ;;  %s133_s11 = smov [#allocation5]  }
   0x3   :  { %s16_s10 = sshll.u32 %s132_s9, 4  ;;  %s26_s12 = sshll.u32 %s133_s11, 4  ;;  %s17_s10 = int_to_ptr.vmem [resolvable:$true] %s16_s10  ;;  %s27_s12 = int_to_ptr.vmem [resolvable:$true] %s26_s12 }
   0x4   :  { %s74_s13 = scalar_lea.vmem %s17_s10, 16  ;;  %s78_s14 = scalar_lea.vmem %s17_s10, 32 }
   0x5   :  { %p75_p0 = scmp.ne.s32.totalorder %s17_s10, %s74_s13  ;;  %p79_p1 = scmp.lt.s32.totalorder %s17_s10, %s17_s10 }
   0x6   :  { %p80_p2 = scmp.lt.s32.totalorder %s78_s14, %s74_s13 }
   0x8   :  { %p81_p3 = por %p80_p2, %p79_p1 }
   0xa   :  { %p82_p4 = pnand %p81_p3, %p75_p0 }
   0xc   :  { %85 = shalt.err (!%p82_p4)
}
   0xd   :  { %19 = dma.hbm_to_vmem [thread:$0]  %s159_s0, 16, %s17_s10, [#allocation3]  }
   0xe   :  { %s94_s17 = scalar_lea.vmem %s27_s12, 32  ;;  %p99_p6 = scmp.lt.s32.totalorder %s27_s12, %s27_s12 }
   0xf   :  { %p95_p5 = scmp.ne.s32.totalorder %s27_s12, %s94_s17  ;;  %p100_p7 = scmp.lt.s32.totalorder %s94_s17, %s94_s17 }
  0x11   :  { %p101_p8 = por %p100_p7, %p99_p6 }
  0x13   :  { %p102_p9 = pnand %p101_p8, %p95_p5 }
  0x15   :  { %105 = shalt.err (!%p102_p9)
}
  0x16   :  { %29 = dma.hbm_to_vmem [thread:$0]  %s160_s1, 32, %s27_s12, [#allocation6]  }
  0x17   :  { %126 = dma.done.wait [#allocation3], 16  }
  0x18   :  { %127 = vsyncadd [#allocation3], 4294967280 }
  0x19   :  { %128 = dma.done.wait [#allocation6], 32  }
  0x1a   :  { %129 = vsyncadd [#allocation6], 4294967264  ;;  %s134_s20 = smov [#allocation7]   ;;  %v36_v0 = vld [vmem:[#allocation5] sm:$0x3] }
  0x1b   :  { %s52_s21 = sshll.u32 %s134_s20, 4  ;;  %v62_v1 = vld [vmem:[#allocation2] ss:$0 sm:$0xff]  ;;  %s53_s21 = int_to_ptr.vmem [resolvable:$true] %s52_s21 }
  0x1c   :  { %v44_v2 = vmul.f32 %v62_v1, %v36_v0  ;;  %s106_s0 = scalar_lea.vmem %s53_s21, 32  ;;  %p111_p11 = scmp.lt.s32.totalorder %s53_s21, %s53_s21 }
  0x1d   :  { %p107_p10 = scmp.ne.s32.totalorder %s53_s21, %s106_s0  ;;  %p112_p12 = scmp.lt.s32.totalorder %s106_s0, %s106_s0 }
  0x1e   :  { %45 = vst [vmem:[#allocation7] sm:$0x3] %v44_v2 }
  0x1f   :  { %p113_p13 = por %p112_p12, %p111_p11 }
  0x21   :  { %p114_p0 = pnand %p113_p13, %p107_p10 }
  0x23   :  { %117 = shalt.err (!%p114_p0)
}
  0x24   :  { %55 = dma.vmem_to_hbm [thread:$0]  %s53_s21, 32, %s161_s2, [#allocation4]  }
  0x25   :  { %130 = dma.done.wait [#allocation4], 32  }
  0x26   :  { %131 = vsyncadd [#allocation4], 4294967264 }
  0x27   :  { %59 = vsyncpa [#allocation3], 1 }
  0x28   :  { %60 = vsyncpa [#allocation6], 1 }
  0x29   :  { %61 = vsyncpa [#allocation4], 1 }

</bundles_post_ra>
